<compile_context>
chip_gen: v5e
topology: v5e:2x2
jax: 0.10.0
libtpu: 0.0.40
codegen_flags: <defaults>
</compile_context>

<pallas_src>
import functools

import jax
import jax.numpy as jnp
from jax.experimental import pallas as pl
from jax.experimental.pallas import tpu as pltpu

_BIG_NEG = -1e30  # bias for padded vocab lanes: never wins the max, exp() -> 0


def _round_up(x, m):
    return (x + m - 1) // m * m


def _vmem_limit(est_bytes):
    """Scoped-VMEM limit: `est_bytes` already counts double-buffering; add
    ~25% headroom and cap by physical VMEM (64 MiB v7x, 128 MiB v5e/v6e)."""
    try:
        phys = pltpu.get_tpu_info().vmem_capacity_bytes
    except Exception:  # query unavailable -> conservative (v7x-sized) cap
        phys = 64 * 1024 * 1024
    cap = min(int(0.85 * phys), 100 * 1024 * 1024)
    return int(min(max(int(1.25 * est_bytes), 32 * 1024 * 1024), cap))


def _logits_lse_kernel(x_ref, w_ref, b_ref, logits_ref, lse_ref, m_ref, l_ref):
    """Single matmul pass.  Writes the unnormalized logits tile and keeps the
    online row-max / row-sum-exp in scratch; emits lse on the last vocab tile."""
    v = pl.program_id(1)

    # bf16 x bf16 -> f32 accumulate on the MXU; bias + softmax stats in f32.
    logits = jnp.dot(x_ref[...], w_ref[...],
                     preferred_element_type=jnp.float32) + b_ref[...]
    logits_ref[...] = logits

    @pl.when(v == 0)
    def _init():
        m_ref[...] = jnp.full_like(m_ref, -jnp.inf)
        l_ref[...] = jnp.zeros_like(l_ref)

    m_old = m_ref[...]
    m_new = jnp.maximum(m_old, jnp.max(logits, axis=-1, keepdims=True))
    l_ref[...] = (l_ref[...] * jnp.exp(m_old - m_new)
                  + jnp.sum(jnp.exp(logits - m_new), axis=-1, keepdims=True))
    m_ref[...] = m_new

    @pl.when(v == pl.num_programs(1) - 1)
    def _emit_lse():
        lse_ref[...] = m_ref[...] + jnp.log(l_ref[...])


def _normalize_kernel(logits_ref, lse_ref, o_ref):
    """Cheap elementwise pass: log_softmax = logits - lse."""
    o_ref[...] = (logits_ref[...] - lse_ref[...]).astype(o_ref.dtype)


@functools.partial(jax.jit, static_argnames=("tm", "tv", "out_dtype"))
def generator_forward(decode_output, weight, bias, *, tm=768, tv=512,
                      out_dtype=jnp.float32):
    """decode_output: [T, B, H]; weight: [H, V] (W^T of the PyTorch Linear);
    bias: [V].  Returns log_softmax(x @ W + b, axis=-1) as [T, B, V]."""
    T, B, H = decode_output.shape
    V = weight.shape[1]
    M = T * B
    out_dtype = jnp.dtype(out_dtype)

    # Tile sizes: rows multiple of 16 (bf16 sublane packing), vocab multiple
    # of 128 lanes; clamp to the (padded) problem so tiny shapes stay tiny.
    tm = _round_up(tm, 16)
    tv = _round_up(tv, 128)
    tm = min(tm, _round_up(M, 16))
    tv = min(tv, _round_up(V, 128))
    # v7x megacore: keep >= 2 row tiles (the "parallel" axis) when there is
    # enough work, instead of serializing everything onto one TensorCore.
    if M > 512 and _round_up(M, tm) == tm:
        tm = max(256, _round_up((M + 1) // 2, 16))

    M_pad = _round_up(M, tm)
    V_pad = _round_up(V, tv)
    n_row = M_pad // tm
    n_voc = V_pad // tv
    # Every vocab tile has >= 1 real lane, so l > 0 and log(l) stays finite.
    assert V_pad - V < tv

    # MXU-native bf16 operands; bias and softmax stats stay f32.
    x2d = decode_output.reshape(M, H).astype(jnp.bfloat16)
    if M_pad != M:
        x2d = jnp.pad(x2d, ((0, M_pad - M), (0, 0)))

    w = weight.astype(jnp.bfloat16)
    b = bias.astype(jnp.float32)
    if V_pad != V:
        w = jnp.pad(w, ((0, 0), (0, V_pad - V)))
        b = jnp.pad(b, ((0, V_pad - V),), constant_values=_BIG_NEG)
    # Pre-tile the weight to [n_voc, H, tv]: each vocab-tile DMA is one
    # contiguous block.  TODO(synk): do this once at parameter-load time.
    w_tiled = jnp.transpose(w.reshape(H, n_voc, tv), (1, 0, 2))
    b2d = b.reshape(1, V_pad)

    # ---- Pass 0: unnormalized logits + per-row lse (single matmul pass) ----
    est1 = (2 * tm * H * 2        # x tile (bf16), double-buffered
            + 2 * H * tv * 2      # weight tile (bf16), double-buffered
            + 2 * tv * 4          # bias tile (f32)
            + 2 * tm * tv * 4     # logits out tile (f32)
            + 2 * tm * 4          # lse out tile
            + 2 * tm * 4)         # m / l scratch
    logits, lse = pl.pallas_call(
        _logits_lse_kernel,
        out_shape=(jax.ShapeDtypeStruct((M_pad, V_pad), jnp.float32),
                   jax.ShapeDtypeStruct((M_pad, 1), jnp.float32)),
        grid_spec=pltpu.PrefetchScalarGridSpec(
            num_scalar_prefetch=0,
            grid=(n_row, n_voc),
            in_specs=[
                # activations: fetched once per row tile (constant over v)
                pl.BlockSpec((tm, H), lambda i, v: (i, 0)),
                # contiguous weight tile (leading dim squeezed away)
                pl.BlockSpec((None, H, tv), lambda i, v: (v, 0, 0)),
                pl.BlockSpec((1, tv), lambda i, v: (0, v)),
            ],
            out_specs=[
                pl.BlockSpec((tm, tv), lambda i, v: (i, v)),
                pl.BlockSpec((tm, 1), lambda i, v: (i, 0)),
            ],
            scratch_shapes=[
                pltpu.VMEM((tm, 1), jnp.float32),   # running row max
                pltpu.VMEM((tm, 1), jnp.float32),   # running row sum-exp
            ],
        ),
        compiler_params=pltpu.CompilerParams(
            dimension_semantics=("parallel", "arbitrary"),
            vmem_limit_bytes=_vmem_limit(est1),
        ),
    )(x2d, w_tiled, b2d)

    # ---- Pass 1: normalize (logits - lse), pure elementwise / HBM-bound ----
    est2 = 2 * tm * tv * 4 + 2 * tm * 4 + 2 * tm * tv * out_dtype.itemsize
    out = pl.pallas_call(
        _normalize_kernel,
        out_shape=jax.ShapeDtypeStruct((M_pad, V_pad), out_dtype),
        grid_spec=pltpu.PrefetchScalarGridSpec(
            num_scalar_prefetch=0,
            grid=(n_row, n_voc),
            in_specs=[
                pl.BlockSpec((tm, tv), lambda i, v: (i, v)),
                pl.BlockSpec((tm, 1), lambda i, v: (i, 0)),
            ],
            out_specs=pl.BlockSpec((tm, tv), lambda i, v: (i, v)),
        ),
        compiler_params=pltpu.CompilerParams(
            dimension_semantics=("parallel", "parallel"),
            vmem_limit_bytes=_vmem_limit(est2),
        ),
        # Normalize in place when dtypes match (saves an [M, V] HBM buffer).
        input_output_aliases=({0: 0} if out_dtype == jnp.float32 else {}),
    )(logits, lse)

    return out[:M, :V].reshape(T, B, V)


if __name__ == "__main__":
    # Small shapes consistent with the module: [T, B, H] -> [T, B, V].
    # M = 14 (padded to 16 rows); V = 320 with tv=128 -> 3 vocab tiles, the
    # last one padded, so row- and vocab-padding paths are both exercised.
    T, B, H, V = 7, 2, 32, 320

    key = jax.random.PRNGKey(0)
    kx, kw, kb = jax.random.split(key, 3)

    decode_output = jax.random.normal(kx, (T, B, H), dtype=jnp.float32)
    # PyTorch Linear weight is [V, H]; we store W^T = [H, V].
    weight = jax.random.normal(kw, (H, V), dtype=jnp.float32) * (1.0 / jnp.sqrt(H))
    bias = jax.random.normal(kb, (V,), dtype=jnp.float32) * 0.01

    out = generator_forward(decode_output, weight, bias, tv=128)
    out = jax.block_until_ready(out)

    # Reference with the same bf16 operand rounding as the kernel.
    xr = decode_output.astype(jnp.bfloat16).astype(jnp.float32)
    wr = weight.astype(jnp.bfloat16).astype(jnp.float32)
    ref = jax.nn.log_softmax(jnp.einsum("tbh,hv->tbv", xr, wr) + bias, axis=-1)

    assert out.shape == (T, B, V)
    err = float(jnp.max(jnp.abs(out - ref)))
    assert err < 2e-3, f"max abs err {err}"
    print("KERNEL_OK")
</pallas_src>

<mosaic_0001>
module attributes {stable_mosaic.version = 11 : i64} {
  func.func @_normalize_kernel(%arg0: i32, %arg1: i32, %arg2: memref<16x128xf32, #tpu.memory_space<vmem>>, %arg3: memref<16x1xf32, #tpu.memory_space<vmem>>, %arg4: memref<16x128xf32, #tpu.memory_space<vmem>>) attributes {dimension_semantics = [#tpu.dimension_semantics<parallel>, #tpu.dimension_semantics<parallel>], iteration_bounds = array<i64: 1, 3>, scalar_prefetch = 0 : i64, scratch_operands = 0 : i64, tpu.core_type = #tpu.core_type<tc>, window_params = [{transform_indices = @transform_0, window_bounds = array<i64: 16, 128>}, {transform_indices = @transform_1, window_bounds = array<i64: 16, 1>}, {transform_indices = @transform_2, window_bounds = array<i64: 16, 128>}]} {
    %c0 = arith.constant 0 : index
    %c0_0 = arith.constant 0 : index
    %0 = vector.load %arg2[%c0, %c0_0] : memref<16x128xf32, #tpu.memory_space<vmem>>, vector<16x128xf32>
    %c0_1 = arith.constant 0 : index
    %c0_2 = arith.constant 0 : index
    %1 = vector.load %arg3[%c0_1, %c0_2] : memref<16x1xf32, #tpu.memory_space<vmem>>, vector<16x1xf32>
    %2 = vector.broadcast %1 : vector<16x1xf32> to vector<16x128xf32>
    %3 = arith.subf %0, %2 : vector<16x128xf32>
    %c0_3 = arith.constant 0 : index
    %c0_4 = arith.constant 0 : index
    %4 = vector.load %arg4[%c0_3, %c0_4] : memref<16x128xf32, #tpu.memory_space<vmem>>, vector<16x128xf32>
    tpu.vector_store %arg4[%c0_3, %c0_4], %3 {strides = array<i32>} : memref<16x128xf32, #tpu.memory_space<vmem>>, vector<16x128xf32>,
    return
  }
  func.func @transform_0(%arg0: i32, %arg1: i32) -> (i32, i32) {
    %c0_i32 = arith.constant 0 : i32
    return %arg0, %arg1 : i32, i32
  }
  func.func @transform_1(%arg0: i32, %arg1: i32) -> (i32, i32) {
    %c0_i32 = arith.constant 0 : i32
    %c0_i32_0 = arith.constant 0 : i32
    return %arg0, %c0_i32 : i32, i32
  }
  func.func @transform_2(%arg0: i32, %arg1: i32) -> (i32, i32) {
    %c0_i32 = arith.constant 0 : i32
    return %arg0, %arg1 : i32, i32
  }
}

module attributes {stable_mosaic.version = 11 : i64} {
  func.func @_logits_lse_kernel(%arg0: i32, %arg1: i32, %arg2: memref<16x32xbf16, #tpu.memory_space<vmem>>, %arg3: memref<1x32x128xbf16, #tpu.memory_space<vmem>>, %arg4: memref<1x128xf32, #tpu.memory_space<vmem>>, %arg5: memref<16x128xf32, #tpu.memory_space<vmem>>, %arg6: memref<16x1xf32, #tpu.memory_space<vmem>>, %arg7: memref<16x1xf32, #tpu.memory_space<vmem>>, %arg8: memref<16x1xf32, #tpu.memory_space<vmem>>) attributes {dimension_semantics = [#tpu.dimension_semantics<parallel>, #tpu.dimension_semantics<arbitrary>], iteration_bounds = array<i64: 1, 3>, scalar_prefetch = 0 : i64, scratch_operands = 2 : i64, tpu.core_type = #tpu.core_type<tc>, window_params = [{transform_indices = @transform_0, window_bounds = array<i64: 16, 32>}, {transform_indices = @transform_1, window_bounds = array<i64: 1, 32, 128>}, {transform_indices = @transform_2, window_bounds = array<i64: 1, 128>}, {transform_indices = @transform_3, window_bounds = array<i64: 16, 128>}, {transform_indices = @transform_4, window_bounds = array<i64: 16, 1>}]} {
    %c0 = arith.constant 0 : index
    %c0_0 = arith.constant 0 : index
    %0 = vector.load %arg2[%c0, %c0_0] : memref<16x32xbf16, #tpu.memory_space<vmem>>, vector<16x32xbf16>
    %c0_1 = arith.constant 0 : index
    %c0_2 = arith.constant 0 : index
    %c0_3 = arith.constant 0 : index
    %1 = vector.load %arg3[%c0_1, %c0_2, %c0_3] : memref<1x32x128xbf16, #tpu.memory_space<vmem>>, vector<1x32x128xbf16>
    %2 = vector.shape_cast %1 : vector<1x32x128xbf16> to vector<32x128xbf16>
    %cst = arith.constant dense<0.000000e+00> : vector<16x128xf32>
    %3 = tpu.matmul %0, %2, %cst {dimension_numbers = #tpu.dot_dimension_numbers<[1], [0], [0], [1], [0, 0, 1, 1], [], []>} : vector<16x32xbf16>, vector<32x128xbf16>, vector<16x128xf32> -> vector<16x128xf32>
    %c0_4 = arith.constant 0 : index
    %c0_5 = arith.constant 0 : index
    %4 = vector.load %arg4[%c0_4, %c0_5] : memref<1x128xf32, #tpu.memory_space<vmem>>, vector<1x128xf32>
    %5 = vector.broadcast %4 : vector<1x128xf32> to vector<16x128xf32>
    %6 = arith.addf %3, %5 : vector<16x128xf32>
    %c0_6 = arith.constant 0 : index
    %c0_7 = arith.constant 0 : index
    %7 = vector.load %arg5[%c0_6, %c0_7] : memref<16x128xf32, #tpu.memory_space<vmem>>, vector<16x128xf32>
    tpu.vector_store %arg5[%c0_6, %c0_7], %6 {strides = array<i32>} : memref<16x128xf32, #tpu.memory_space<vmem>>, vector<16x128xf32>,
    %c0_i32 = arith.constant 0 : i32
    %8 = arith.cmpi eq, %arg1, %c0_i32 : i32
    %9 = arith.extui %8 : i1 to i32
    %c0_i32_8 = arith.constant 0 : i32
    %10 = arith.cmpi ne, %9, %c0_i32_8 : i32
    scf.if %10 {
      %cst_20 = arith.constant 0xFF800000 : f32
      %30 = vector.broadcast %cst_20 : f32 to vector<16x1xf32>
      %c0_21 = arith.constant 0 : index
      %c0_22 = arith.constant 0 : index
      %31 = vector.load %arg7[%c0_21, %c0_22] : memref<16x1xf32, #tpu.memory_space<vmem>>, vector<16x1xf32>
      tpu.vector_store %arg7[%c0_21, %c0_22], %30 {strides = array<i32>} : memref<16x1xf32, #tpu.memory_space<vmem>>, vector<16x1xf32>,
      %cst_23 = arith.constant 0.000000e+00 : f32
      %32 = vector.broadcast %cst_23 : f32 to vector<16x1xf32>
      %c0_24 = arith.constant 0 : index
      %c0_25 = arith.constant 0 : index
      %33 = vector.load %arg8[%c0_24, %c0_25] : memref<16x1xf32, #tpu.memory_space<vmem>>, vector<16x1xf32>
      tpu.vector_store %arg8[%c0_24, %c0_25], %32 {strides = array<i32>} : memref<16x1xf32, #tpu.memory_space<vmem>>, vector<16x1xf32>,
    } else {
    }
    %c0_9 = arith.constant 0 : index
    %c0_10 = arith.constant 0 : index
    %11 = vector.load %arg7[%c0_9, %c0_10] : memref<16x1xf32, #tpu.memory_space<vmem>>, vector<16x1xf32>
    %cst_11 = arith.constant dense<0xFF800000> : vector<16xf32>
    %12 = vector.multi_reduction <maximumf>, %6, %cst_11 [1] : vector<16x128xf32> to vector<16xf32>
    %13 = vector.shape_cast %12 : vector<16xf32> to vector<16x1xf32>
    %14 = arith.maximumf %11, %13 : vector<16x1xf32>
    %c0_12 = arith.constant 0 : index
    %c0_13 = arith.constant 0 : index
    %15 = vector.load %arg8[%c0_12, %c0_13] : memref<16x1xf32, #tpu.memory_space<vmem>>, vector<16x1xf32>
    %16 = arith.subf %11, %14 : vector<16x1xf32>
    %17 = math.exp %16 : vector<16x1xf32>
    %18 = arith.mulf %15, %17 : vector<16x1xf32>
    %19 = vector.broadcast %14 : vector<16x1xf32> to vector<16x128xf32>
    %20 = arith.subf %6, %19 : vector<16x128xf32>
    %21 = math.exp %20 : vector<16x128xf32>
    %cst_14 = arith.constant dense<0.000000e+00> : vector<16xf32>
    %22 = vector.multi_reduction <add>, %21, %cst_14 [1] : vector<16x128xf32> to vector<16xf32>
    %23 = vector.shape_cast %22 : vector<16xf32> to vector<16x1xf32>
    %24 = arith.addf %18, %23 : vector<16x1xf32>
    %c0_15 = arith.constant 0 : index
    %c0_16 = arith.constant 0 : index
    %25 = vector.load %arg8[%c0_15, %c0_16] : memref<16x1xf32, #tpu.memory_space<vmem>>, vector<16x1xf32>
    tpu.vector_store %arg8[%c0_15, %c0_16], %24 {strides = array<i32>} : memref<16x1xf32, #tpu.memory_space<vmem>>, vector<16x1xf32>,
    %c0_17 = arith.constant 0 : index
    %c0_18 = arith.constant 0 : index
    %26 = vector.load %arg7[%c0_17, %c0_18] : memref<16x1xf32, #tpu.memory_space<vmem>>, vector<16x1xf32>
    tpu.vector_store %arg7[%c0_17, %c0_18], %14 {strides = array<i32>} : memref<16x1xf32, #tpu.memory_space<vmem>>, vector<16x1xf32>,
    %c2_i32 = arith.constant 2 : i32
    %27 = arith.cmpi eq, %arg1, %c2_i32 : i32
    %28 = arith.extui %27 : i1 to i32
    %c0_i32_19 = arith.constant 0 : i32
    %29 = arith.cmpi ne, %28, %c0_i32_19 : i32
    scf.if %29 {
      %c0_20 = arith.constant 0 : index
      %c0_21 = arith.constant 0 : index
      %30 = vector.load %arg7[%c0_20, %c0_21] : memref<16x1xf32, #tpu.memory_space<vmem>>, vector<16x1xf32>
      %c0_22 = arith.constant 0 : index
      %c0_23 = arith.constant 0 : index
      %31 = vector.load %arg8[%c0_22, %c0_23] : memref<16x1xf32, #tpu.memory_space<vmem>>, vector<16x1xf32>
      %32 = math.log %31 : vector<16x1xf32>
      %33 = arith.addf %30, %32 : vector<16x1xf32>
      %c0_24 = arith.constant 0 : index
      %c0_25 = arith.constant 0 : index
      %34 = vector.load %arg6[%c0_24, %c0_25] : memref<16x1xf32, #tpu.memory_space<vmem>>, vector<16x1xf32>
      tpu.vector_store %arg6[%c0_24, %c0_25], %33 {strides = array<i32>} : memref<16x1xf32, #tpu.memory_space<vmem>>, vector<16x1xf32>,
    } else {
    }
    return
  }
  func.func @transform_0(%arg0: i32, %arg1: i32) -> (i32, i32) {
    %c0_i32 = arith.constant 0 : i32
    %c0_i32_0 = arith.constant 0 : i32
    return %arg0, %c0_i32 : i32, i32
  }
  func.func @transform_1(%arg0: i32, %arg1: i32) -> (i32, i32, i32) {
    %c0_i32 = arith.constant 0 : i32
    %c0_i32_0 = arith.constant 0 : i32
    %c0_i32_1 = arith.constant 0 : i32
    return %arg1, %c0_i32, %c0_i32_0 : i32, i32, i32
  }
  func.func @transform_2(%arg0: i32, %arg1: i32) -> (i32, i32) {
    %c0_i32 = arith.constant 0 : i32
    %c0_i32_0 = arith.constant 0 : i32
    return %c0_i32, %arg1 : i32, i32
  }
  func.func @transform_3(%arg0: i32, %arg1: i32) -> (i32, i32) {
    %c0_i32 = arith.constant 0 : i32
    return %arg0, %arg1 : i32, i32
  }
  func.func @transform_4(%arg0: i32, %arg1: i32) -> (i32, i32) {
    %c0_i32 = arith.constant 0 : i32
    %c0_i32_0 = arith.constant 0 : i32
    return %arg0, %c0_i32 : i32, i32
  }
}

</mosaic_0001>

<bundles_post_ra>
// kernel: generator_forward.3
= control target key start
LH: loop header
LB: loop body
LE: loop exit
PB: predicated region body
PF: predicated region fallthrough
CT: control target
= control target key end

     0   :  { %s483_s9 = smov 0   ;;  %s485_s10 = smov 0   ;;  %s561_s0 = inlined_call_operand.vmem [shape: f32[16,384], index: 0, kind: input, shape index: {}, may-alias: {0,2}]   ;;  %s562_s1 = inlined_call_operand.vmem [shape: f32[16,1], index: 1, kind: input, shape index: {}]   ;;  %s563_s2 = inlined_call_operand.vmem [shape: f32[16,384], index: 2, kind: output, shape index: {}, may-alias: {0,2}]  }
   0x1   :  { %s487_s11 = smov 0   ;;  %s489_s12 = smov 0  }
   0x2   :  { %s491_s13 = smov 0  }
   0x3 LB: > { %s21_s14 = sadd.s32 1, %s461_s12  ;;  %s371_s15 = sadd.s32 4294967295, %s465_s13   ;;  %s465_s13 = sphi %s491_s13, %s12_s13   ;;  %s461_s12 = sphi %s489_s12, %s568_s12   ;;  %s457_s11 = sphi %s487_s11, %s567_s11   ;;  %s453_s10 = sphi %s485_s10, %s566_s10   ;;  %s449_s9 = sphi %s483_s9, %s565_s9  }
   0x4   : > { %p22_p0 = scmp.ge.s32.totalorder %s21_s14, 3  ;;  %p40_p1 = scmp.ne.s32.totalorder %s453_s10, %s449_s9 }
   0x5   : > { %p41_p2 = scmp.eq.s32.totalorder %s465_s13, 0  ;;  %p98_p4 = scmp.eq.s32.totalorder %s371_s15, 2 }
   0x6   : > { %s570_s14 = smov (%p22_p0, %s21_s14), 0  ;;  %s33_s17 = sadd.s32 1, %s453_s10 }
   0x7   : > { %p42_p3 = por %p41_p2, %p40_p1  ;;  %s29_s16 = ssub.s32 %s461_s12, %s570_s14 }
   0x8   : > { %p31_p5 = scmp.eq.s32.totalorder %s29_s16, 0  ;;  %p518_p6 = por %p98_p4, %p40_p1 }
   0x9   : > { %p375_p7 = scmp.ge.s32.totalorder %s465_s13, 3 }
   0xa   : > { %s523_s19 = scalar_select %p31_p5, %s453_s10, %s33_s17  }
   0xb   : > { %129 = sbr.rel (%p375_p7) target bundleno = 22 (0x16), region = 20 }
  0x10   : > { %132 = sbr.rel (!%p42_p3) target bundleno = 22 (0x16), region = 24  ;;  %s134_s20 = sand.u32 (%p42_p3), 1, %s453_s10  }
  0x11   : > { %s377_s21 = sshll.u32 (%p42_p3), %s461_s12, 3  ;;  %s376_s22 = sshll.u32 (%p42_p3), %s134_s20, 4 }
  0x12   : > { %s141_s25 = scalar_lea.vmem (%p42_p3), %s561_s0, %s377_s21  ;;  %s136_s26 = scalar_lea.vmem (%p42_p3), [#allocation2], %s376_s22 }
  0x13   : > { %v172_v0 = vld [vmem:[%s141_s25] sm:$0xff] (%p42_p3)  ;;  %v174_v1 = vld [vmem:[%s141_s25 + $0x18] sm:$0xff] (%p42_p3) }
  0x14   : > { %173 = vst [vmem:[%s136_s26] sm:$0xff] (%p42_p3), %v172_v0 }
  0x15   : > { %175 = vst [vmem:[%s136_s26 + $0x8] sm:$0xff] %v174_v1 }
  0x16 PF: > { %p378_p8 = scmp.ge.s32.totalorder %s465_s13, 1  ;;  %p180_p9 = scmp.lt.s32.totalorder %s465_s13, 4 }
  0x18   : > { %p181_p10 = pnand %p378_p8, %p180_p9 }
  0x19   : > { %s187_s3 = sand.u32 (!%p181_p10), 1, %s449_s9  }
  0x1a   : > { %184 = sbr.rel (%p181_p10) target bundleno = 167 (0xa7), region = 62  ;;  %s379_s4 = sshll.u32 (!%p181_p10), %s187_s3, 4 }
  0x1b   : > { %s189_s5 = scalar_lea.vmem (!%p181_p10), [#allocation2], %s379_s4  ;;  %s211_s6 = scalar_lea.vmem (!%p181_p10), [#allocation3], %s379_s4 }
  0x1f   : > { %v222_v2 = vld [vmem:[%s562_s1] sm:$0xff]  ;;  %v467_v3 = vmov 0   ;;  %v223_v4 = vld [vmem:[%s562_s1 + $0x8] sm:$0xff]  ;;  %s382_s7 = sshll.u32 (%p518_p6), %s457_s11, 3 }
  0x20   : > { %426 = vset.pattern.permute.xlu0 %v467_v3  ;;  %v220_v5 = vld [vmem:[%s189_s5] sm:$0xff]  ;;  %v221_v8 = vld [vmem:[%s189_s5 + $0x8] sm:$0xff]  ;;  %s249_s15 = scalar_lea.vmem (%p518_p6), %s563_s2, %s382_s7 }
  0x21   : > { %226 = vperm.xlu0 %426, %v222_v2  }
  0x29   : > { %231 = vperm.xlu0 %426, %v223_v4  }
  0x93   : > { %v227_v6 = vpop.permute.xlu0 %226 }
  0x94   : > { %v234_v7 = vsub.f32 %v220_v5, %v227_v6 }
  0x96   : > { %236 = vst [vmem:[%s211_s6] sm:$0xff] %v234_v7 }
  0x9a   : > { %244 = sbr.rel (!%p518_p6) target bundleno = 167 (0xa7), region = 70 }
  0x9b   : > { %v232_v9 = vpop.permute.xlu0 %231 }
  0x9c   : > { %v235_v10 = vsub.f32 %v221_v8, %v232_v9 }
  0x9d   : > { %v280_v11 = vld [vmem:[%s211_s6] sm:$0xff] (%p518_p6) }
  0x9e   : > { %237 = vst [vmem:[%s211_s6 + $0x8] sm:$0xff] %v235_v10 }
  0x9f   : > { %281 = vst [vmem:[%s249_s15] sm:$0xff] %v280_v11 }
  0xa5   : > { %v282_v12 = vld [vmem:[%s211_s6 + $0x8] sm:$0xff] }
  0xa6   : > { %283 = vst [vmem:[%s249_s15 + $0x18] sm:$0xff] %v282_v12 }
  0xa7 PF: > { %s12_s13 = sadd.s32 1, %s465_s13   ;;  %s565_s9 = smov %s453_s10 }
  0xa8   : > { %p9_p11 = scmp.ge.s32.totalorder %s12_s13, 5   ;;  %s566_s10 = smov %s523_s19 }
  0xa9   : > { %s567_s11 = smov %s461_s12  ;;  %s568_s12 = smov %s570_s14 }
  0xaa   :  { %11 = sbr.rel (!%p9_p11) target bundleno = 3 (0x3), region = 142 }

// kernel: generator_forward.2
= control target key start
LH: loop header
LB: loop body
LE: loop exit
PB: predicated region body
PF: predicated region fallthrough
CT: control target
= control target key end

     0   :  { %s700_s15 = smov 0   ;;  %s702_s16 = smov 0   ;;  %s796_s0 = inlined_call_operand.vmem [shape: bf16[16,32], index: 0, kind: input, shape index: {}]   ;;  %s797_s1 = inlined_call_operand.vmem [shape: bf16[3,32,128], index: 1, kind: input, shape index: {}]   ;;  %s798_s2 = inlined_call_operand.vmem [shape: f32[1,384], index: 2, kind: input, shape index: {}]   ;;  %s799_s3 = inlined_call_operand.vmem [shape: f32[16,384], index: 3, kind: output, shape index: {0}]   ;;  %s800_s4 = inlined_call_operand.vmem [shape: f32[16,1], index: 4, kind: output, shape index: {1}]  }
   0x1   :  { %s704_s17 = smov 0   ;;  %s706_s18 = smov 0  }
   0x2   :  { %s708_s19 = smov 0  }
   0x3 LB: > { %s540_s20 = sadd.s32 4294967295, %s670_s19   ;;  %s24_s21 = sadd.s32 1, %s666_s18  ;;  %s670_s19 = sphi %s708_s19, %s15_s19   ;;  %s666_s18 = sphi %s706_s18, %s805_s18   ;;  %s662_s17 = sphi %s704_s17, %s804_s17   ;;  %s658_s16 = sphi %s702_s16, %s803_s16   ;;  %s654_s15 = sphi %s700_s15, %s802_s15  }
   0x4   : > { %p25_p0 = scmp.ge.s32.totalorder %s24_s21, 3  ;;  %s114_s22 = sadd.s32 1, %s658_s16 }
   0x5   : > { %p124_p1 = scmp.ne.s32.totalorder %s658_s16, %s654_s15  ;;  %p125_p2 = scmp.eq.s32.totalorder %s540_s20, 2 }
   0x6   : > { %s807_s21 = smov (%p25_p0, %s24_s21), 0  ;;  %p545_p4 = scmp.ge.s32.totalorder %s670_s19, 1 }
   0x7   : > { %p732_p3 = por %p125_p2, %p124_p1  ;;  %s110_s24 = ssub.s32 %s666_s18, %s807_s21 }
   0x8   : > { %p198_p5 = scmp.lt.s32.totalorder %s670_s19, 4  ;;  %p112_p6 = scmp.eq.s32.totalorder %s110_s24, 0 }
   0xa   : > { %p199_p7 = pnand %p545_p4, %p198_p5 }
   0xb   : > { %s741_s25 = scalar_select %p112_p6, %s658_s16, %s114_s22  }
   0xc   : > { %202 = sbr.rel (%p199_p7) target bundleno = 566 (0x236), region = 32  ;;  %p242_p8 = scmp.lt.s32.totalorder (!%p199_p7), %s662_s17, 2 }
   0xd   : > { %s226_s10 = sand.u32 (!%p199_p7), 1, %s654_s15   ;;  %p562_p9 = scmp.ne.s32.totalorder (!%p199_p7), %s662_s17, 0 }
   0xe   : > { %s546_s11 = sshll.u32 (!%p199_p7), %s226_s10, 4 }
   0xf   : > { %s755_s12 = scalar_lea.vmem (!%p199_p7), [#allocation4], %s546_s11 }
  0x11   : > { %s243_s26 = scalar_select %p242_p8, %s662_s17, 2  ;;  %v571_v2 = vld [vmem:[%s796_s0] sm:$0xff]  ;;  %vm285_vm0 = vcmask 261120  }
  0x13   : > { %s570_s27 = sshll.u32 %s243_s26, 4  ;;  %s249_s30 = scalar_lea.vmem %s798_s2, %s243_s26 }
  0x14   : > { %s246_s7 = scalar_lea.vmem %s797_s1, %s570_s27  ;;  %v617_v3 = vld [vmem:[%s249_s30] ss:$0 sm:$0xff] }
  0x15   : > { %v573_v0 = vld [vmem:[%s246_s7 + $0x8] sm:$0xff]  ;;  %v572_v1 = vld [vmem:[%s246_s7] sm:$0xff] }
  0x16   : > { %295 = vmatpush.bf16.msra.mxu0 %v573_v0 }
  0x1a   : > { %296 = vmatpush.bf16.msra.mxu0 %v572_v1 }
  0x1d   : > { %561 = vmatmul.msk.bf16.vlgmr.msra.gmra.mxu0 %vm285_vm0, %v571_v2 }
  0x9a   : > { %v298_v4 = vpop.f32.mrf.mxu0 }
  0x9b   : > { %v299_v5 = vadd.f32 %v617_v3, %v298_v4 }
  0x9d   : > { %303 = vst [vmem:[%s755_s12] sm:$0xff] %v299_v5 }
  0xa1   : > { %308 = sbr.rel (%p562_p9) target bundleno = 171 (0xab), region = 36 }
  0xa2   : > { %v300_v6 = vpop.f32.mrf.mxu0 }
  0xa3   : > { %v301_v7 = vadd.f32 %v617_v3, %v300_v6 }
  0xa5   : > { %304 = vst [vmem:[%s755_s12 + $0x8] sm:$0xff] %v301_v7 }
  0xa6   : > { %vm309_vm1 = vcmask 7168   ;;  %v672_v8 = vmov -inf   ;;  %v673_v9 = vmov 0.0  }
  0xa7   : > { %310 = vst.msk [vmem:[#allocation2] sm:$0xff] %vm309_vm1, %v672_v8 }
  0xa8   : > { %311 = vst.msk [vmem:[#allocation2 + $0x8] sm:$0xff] %vm309_vm1, %v672_v8 }
  0xa9   : > { %312 = vst.msk [vmem:[#allocation3] sm:$0xff] %vm309_vm1, %v673_v9 }
  0xaa   : > { %313 = vst.msk [vmem:[#allocation3 + $0x8] sm:$0xff] %vm309_vm1, %v673_v9 }
  0xab PF: > { %316 = vmax.xlane.f32.xlu0 %v299_v5  ;;  %v674_v10 = vmov 0   ;;  %vm354_vm2 = vcmask 7168   ;;  %p563_p10 = scmp.ne.s32.totalorder %s662_s17, 2 }
  0xac   : > { %618 = vset.pattern.permute.xlu1 %v674_v10  ;;  %619 = vset.pattern.permute.xlu0 %v674_v10 }
  0xae   : > { %v314_v11 = vld [vmem:[#allocation2] sm:$0xff] }
  0xaf   : > { %v315_v15 = vld [vmem:[#allocation2 + $0x8] sm:$0xff] }
  0xb0   : > { %v322_v30 = vld [vmem:[#allocation3] sm:$0xff] }
  0xb1   : > { %v323_v35 = vld [vmem:[#allocation3 + $0x8] sm:$0xff] }
  0xb3   : > { %318 = vmax.xlane.f32.xlu0 %v301_v7 }
 0x11e   : > { %v317_v12 = vpop.xlane.xlu0 %316 }
 0x11f   : > { %v320_v13 = vmax.f32 %v314_v11, %v317_v12 }
 0x121   : > { %v324_v14 = vsub.f32 %v314_v11, %v320_v13  ;;  %357 = vst.msk [vmem:[#allocation2] sm:$0xff] %vm354_vm2, %v320_v13  ;;  %334 = vperm.xlu1 %618, %v320_v13  }
 0x123   : > { %v326_v27 = vmul.f32 1.442695, %v324_v14 }
 0x126   : > { %v319_v16 = vpop.xlane.xlu0 %318 }
 0x127   : > { %v321_v17 = vmax.f32 %v315_v15, %v319_v16 }
 0x129   : > { %v325_v18 = vsub.f32 %v315_v15, %v321_v17  ;;  %358 = vst.msk [vmem:[#allocation2 + $0x8] sm:$0xff] %vm354_vm2, %v321_v17  ;;  %339 = vperm.xlu1 %618, %v321_v17  }
 0x12b   : > { %v328_v28 = vmul.f32 1.442695, %v325_v18 }
 0x193   : > { %v335_v19 = vpop.permute.xlu1 %334 }
 0x194   : > { %v342_v20 = vsub.f32 %v299_v5, %v335_v19 }
 0x196   : > { %v344_v21 = vmul.f32 1.442695, %v342_v20 }
 0x198   : > { %620 = vpow2.f32 %v344_v21 }
 0x19b   : > { %v340_v22 = vpop.permute.xlu1 %339 }
 0x19c   : > { %v343_v23 = vsub.f32 %v301_v7, %v340_v22 }
 0x19e   : > { %v621_v24 = vpop.eup %620  ;;  %v346_v25 = vmul.f32 1.442695, %v343_v23 }
 0x19f   : > { %348 = vadd.xlane.f32.xlu2 %v621_v24 }
 0x1a0   : > { %622 = vpow2.f32 %v346_v25 }
 0x1a1   : > { %624 = vpow2.f32 %v326_v27 }
 0x1a2   : > { %626 = vpow2.f32 %v328_v28 }
 0x1a6   : > { %v623_v26 = vpop.eup %622 }
 0x1a7   : > { %350 = vadd.xlane.f32.xlu2 %v623_v26  ;;  %v625_v29 = vpop.eup %624 }
 0x1a8   : > { %v330_v31 = vmul.f32 %v625_v29, %v322_v30  ;;  %v627_v34 = vpop.eup %626 }
 0x1a9   : > { %v331_v36 = vmul.f32 %v627_v34, %v323_v35 }
 0x212   : > { %v349_v32 = vpop.xlane.xlu2 %348 }
 0x213   : > { %v352_v33 = vadd.f32 %v349_v32, %v330_v31 }
 0x215   : > { %355 = vst.msk [vmem:[#allocation3] sm:$0xff] %vm354_vm2, %v352_v33 }
 0x219   : > { %362 = sbr.rel (%p563_p10) target bundleno = 561 (0x231), region = 40 }
 0x21a   : > { %v351_v37 = vpop.xlane.xlu2 %350 }
 0x21b   : > { %v353_v38 = vadd.f32 %v351_v37, %v331_v36 }
 0x21d   : > { %356 = vst.msk [vmem:[#allocation3 + $0x8] sm:$0xff] %vm354_vm2, %v353_v38 }
 0x21e   : > { %v365_v39 = vld [vmem:[#allocation3] sm:$0xff]  ;;  %v363_v42 = vld [vmem:[#allocation2] sm:$0xff]  ;;  %v364_v45 = vld [vmem:[#allocation2 + $0x8] sm:$0xff] }
 0x21f   : > { %628 = vlog2.f32 %v365_v39 }
 0x224   : > { %v366_v40 = vld [vmem:[#allocation3 + $0x8] sm:$0xff] }
 0x225   : > { %630 = vlog2.f32 %v366_v40  ;;  %v629_v41 = vpop.eup %628 }
 0x226   : > { %v368_v44 = vmul.f32 0.6931472, %v629_v41 }
 0x228   : > { %v371_v47 = vadd.f32 %v368_v44, %v363_v42 }
 0x22a   : > { %373 = vst.msk [vmem:[%s800_s4] sm:$0xff] %vm354_vm2, %v371_v47 }
 0x22b   : > { %v631_v43 = vpop.eup %630 }
 0x22c   : > { %v370_v46 = vmul.f32 0.6931472, %v631_v43 }
 0x22e   : > { %v372_v48 = vadd.f32 %v370_v46, %v364_v45 }
 0x230   : > { %374 = vst.msk [vmem:[%s800_s4 + $0x8] sm:$0xff] %vm354_vm2, %v372_v48 }
 0x231 PF: > { %386 = sbr.rel (!%p732_p3) target bundleno = 566 (0x236), region = 44  ;;  %s565_s22 = sshll.u32 (%p732_p3), %s662_s17, 3  ;;  %v422_v49 = vld [vmem:[%s755_s12] sm:$0xff] (%p732_p3)  ;;  %v424_v50 = vld [vmem:[%s755_s12 + $0x8] sm:$0xff] (%p732_p3) }
 0x232   : > { %s391_s27 = scalar_lea.vmem (%p732_p3), %s799_s3, %s565_s22 }
 0x233   : > { %423 = vst [vmem:[%s391_s27] sm:$0xff] (%p732_p3), %v422_v49 }
 0x234   : > { %425 = vst [vmem:[%s391_s27 + $0x18] sm:$0xff] (%p732_p3), %v424_v50 }
 0x236 PF: > { %s15_s19 = sadd.s32 1, %s670_s19   ;;  %s802_s15 = smov %s658_s16 }
 0x237   : > { %p12_p11 = scmp.ge.s32.totalorder %s15_s19, 5   ;;  %s803_s16 = smov %s741_s25 }
 0x238   : > { %s804_s17 = smov %s666_s18  ;;  %s805_s18 = smov %s807_s21 }
 0x239   :  { %14 = sbr.rel (!%p12_p11) target bundleno = 3 (0x3), region = 126 }

</bundles_post_ra>
